<compile_context>
chip_gen: v7x
topology: tpu7x:2x2x1
jax: 0.10.0
libtpu: 0.0.40
codegen_flags: <defaults>
</compile_context>

<pallas_src>
import functools

import jax
import jax.numpy as jnp
from jax import lax
from jax.experimental import pallas as pl
from jax.experimental.pallas import tpu as pltpu


# ----------------------------- kernels ---------------------------------------

def _cin_fused_kernel(x_ref, g_ref, b_ref, o_ref, *, hw):
    """Single pass: per-row mean/var -> normalize + affine. Block = (rows, HW)."""
    # TODO(synk): hw == 1 yields NaN (unbiased std of one element), same as torch.
    ddof_inv = (1.0 / (hw - 1)) if hw > 1 else float("nan")
    x = x_ref[...].astype(jnp.float32)                       # (rows, HW)
    mean = jnp.sum(x, axis=-1, keepdims=True) * (1.0 / hw)   # (rows, 1)
    xc = x - mean
    var = jnp.sum(xc * xc, axis=-1, keepdims=True) * ddof_inv
    std = jnp.sqrt(jnp.maximum(var, 0.0))
    scale = g_ref[...] / (std + 1e-5)                        # (rows, 1)
    o_ref[...] = (xc * scale + b_ref[...]).astype(o_ref.dtype)


def _cin_stats_kernel(x_ref, g_ref, b_ref, scale_ref, shift_ref,
                      mean_ref, m2_ref, *, hw, hw_tile):
    """Streaming per-row statistics over HW tiles (Chan/Welford combine).

    x_ref: (rows, hw_tile)   g_ref/b_ref: (rows, 1)
    scale_ref/shift_ref (out, resident across the tile axis): (rows, 1)
    mean_ref/m2_ref (VMEM scratch): (rows, 1) f32 running mean / centered SSQ.
    """
    t = pl.program_id(1)

    @pl.when(t == 0)
    def _init():
        mean_ref[...] = jnp.zeros_like(mean_ref)
        m2_ref[...] = jnp.zeros_like(m2_ref)

    x = x_ref[...].astype(jnp.float32)                       # (rows, hw_tile)
    off = t * hw_tile                                        # scalar int32
    if hw % hw_tile != 0:
        # ragged last tile: mask lanes >= hw (OOB lanes hold undefined data)
        rem = hw - off
        lane = lax.broadcasted_iota(jnp.int32, x.shape, 1)
        valid = lane < rem
        n_t = jnp.minimum(rem, hw_tile).astype(jnp.float32)
        xz = jnp.where(valid, x, 0.0)
        m_t = jnp.sum(xz, axis=-1, keepdims=True) / n_t
        xc = jnp.where(valid, x - m_t, 0.0)
    else:
        n_t = float(hw_tile)
        m_t = jnp.sum(x, axis=-1, keepdims=True) / n_t
        xc = x - m_t
    s_t = jnp.sum(xc * xc, axis=-1, keepdims=True)

    # Combine tile stats into the running (mean, M2) -- all earlier tiles full.
    cnt_prev = off.astype(jnp.float32)
    cnt_new = cnt_prev + n_t
    delta = m_t - mean_ref[...]
    mean_ref[...] = mean_ref[...] + delta * (n_t / cnt_new)
    m2_ref[...] = m2_ref[...] + s_t + (delta * delta) * (cnt_prev * n_t / cnt_new)

    @pl.when(t == pl.num_programs(1) - 1)
    def _finalize():
        # TODO(synk): hw == 1 yields NaN (unbiased std), same as torch.
        ddof_inv = (1.0 / (hw - 1)) if hw > 1 else float("nan")
        var = m2_ref[...] * ddof_inv
        std = jnp.sqrt(jnp.maximum(var, 0.0))
        sc = g_ref[...] / (std + 1e-5)
        scale_ref[...] = sc
        shift_ref[...] = b_ref[...] - mean_ref[...] * sc


def _cin_apply_kernel(x_ref, scale_ref, shift_ref, o_ref):
    """out = x * scale + shift (one FMA per element, lane-dense stores)."""
    o_ref[...] = (x_ref[...].astype(jnp.float32) * scale_ref[...]
                  + shift_ref[...]).astype(o_ref.dtype)


# ----------------------------- sizing helpers ---------------------------------

_MIB = 1024 * 1024


def _vmem_budget():
    """Generation-aware VMEM budget (v7x has 64 MiB VMEM, v5e/v6e have 128)."""
    vmem_phys = 64 * _MIB
    try:
        info = pltpu.get_tpu_info()
        cap = getattr(info, "vmem_capacity_bytes", None)
        if cap:
            vmem_phys = int(cap)
    except Exception:
        pass  # conservative (v7x-sized) defaults
    if vmem_phys >= 100 * _MIB:                       # v5e / v6e
        return dict(fused_block_bytes=8 * _MIB,
                    stream_block_bytes=4 * _MIB,
                    vmem_limit_bytes=80 * _MIB)
    return dict(fused_block_bytes=4 * _MIB,           # v7x
                stream_block_bytes=2 * _MIB,
                vmem_limit_bytes=40 * _MIB)


def _pick_row_block(nc, hw, cap_bytes):
    """Rows per fused block: multiple of 8 (or all rows), (rows*hw*4) <= cap.
    Returns None if the fused path does not fit."""
    row_bytes = hw * 4
    if nc * row_bytes <= cap_bytes:
        if nc >= 16 and nc % 8 == 0:
            # split into >= 2 blocks so both v7x TensorCores get work
            half = (nc // 2) // 8 * 8
            while half > 8 and nc % half != 0:
                half -= 8
            if half >= 8 and nc % half == 0:
                return half
        return nc
    if nc < 8 or 8 * row_bytes > cap_bytes:
        return None
    r = min(nc // 8 * 8, (cap_bytes // row_bytes) // 8 * 8)
    while r > 8 and nc % r != 0:          # prefer an exact divisor (no ragged block)
        r -= 8
    return r


def _pick_hw_tile(hw, rows, target_bytes):
    """Lane-dense HW tile sized from the byte budget, preferring a divisor of hw."""
    if hw < 128:
        return hw
    cap = max(128, (target_bytes // (rows * 4)) // 128 * 128)
    cap = min(cap, hw // 128 * 128)
    t = cap
    while t >= 128:
        if hw % t == 0:
            return t                      # divisor: no ragged last tile at all
        t -= 128
    return cap                            # ragged last tile handled in-kernel


# ------------------------------- wrapper --------------------------------------

def _cin_fused(x2, g_row, b_row, hw, r_blk, budget):
    nc = x2.shape[0]
    return pl.pallas_call(
        functools.partial(_cin_fused_kernel, hw=hw),
        out_shape=jax.ShapeDtypeStruct((nc, hw), x2.dtype),
        grid_spec=pltpu.PrefetchScalarGridSpec(
            num_scalar_prefetch=0,
            grid=(pl.cdiv(nc, r_blk),),
            in_specs=[
                pl.BlockSpec((r_blk, hw), lambda i: (i, 0)),
                pl.BlockSpec((r_blk, 1), lambda i: (i, 0)),
                pl.BlockSpec((r_blk, 1), lambda i: (i, 0)),
            ],
            out_specs=pl.BlockSpec((r_blk, hw), lambda i: (i, 0)),
        ),
        compiler_params=pltpu.CompilerParams(
            dimension_semantics=("parallel",),
            vmem_limit_bytes=budget["vmem_limit_bytes"]),
    )(x2, g_row, b_row)


def _cin_two_pass(x2, g_row, b_row, hw, budget, hw_tile):
    nc = x2.shape[0]
    r_blk = nc if nc < 8 else 8
    if hw_tile is None:
        hw_tile = _pick_hw_tile(hw, r_blk, budget["stream_block_bytes"])
    rb = pl.cdiv(nc, r_blk)
    T = pl.cdiv(hw, hw_tile)

    # pass 1: streaming per-row statistics -> fused scale / shift
    scale, shift = pl.pallas_call(
        functools.partial(_cin_stats_kernel, hw=hw, hw_tile=hw_tile),
        out_shape=(jax.ShapeDtypeStruct((nc, 1), jnp.float32),
                   jax.ShapeDtypeStruct((nc, 1), jnp.float32)),
        grid_spec=pltpu.PrefetchScalarGridSpec(
            num_scalar_prefetch=0,
            grid=(rb, T),
            in_specs=[
                pl.BlockSpec((r_blk, hw_tile), lambda i, t: (i, t)),
                pl.BlockSpec((r_blk, 1), lambda i, t: (i, 0)),
                pl.BlockSpec((r_blk, 1), lambda i, t: (i, 0)),
            ],
            out_specs=[
                pl.BlockSpec((r_blk, 1), lambda i, t: (i, 0)),
                pl.BlockSpec((r_blk, 1), lambda i, t: (i, 0)),
            ],
            scratch_shapes=[pltpu.VMEM((r_blk, 1), jnp.float32),
                            pltpu.VMEM((r_blk, 1), jnp.float32)],
        ),
        compiler_params=pltpu.CompilerParams(
            dimension_semantics=("parallel", "arbitrary"),
            vmem_limit_bytes=budget["vmem_limit_bytes"]),
    )(x2, g_row, b_row)

    # pass 2: out = x * scale + shift
    return pl.pallas_call(
        _cin_apply_kernel,
        out_shape=jax.ShapeDtypeStruct((nc, hw), x2.dtype),
        grid_spec=pltpu.PrefetchScalarGridSpec(
            num_scalar_prefetch=0,
            grid=(rb, T),
            in_specs=[
                pl.BlockSpec((r_blk, hw_tile), lambda i, t: (i, t)),
                pl.BlockSpec((r_blk, 1), lambda i, t: (i, 0)),
                pl.BlockSpec((r_blk, 1), lambda i, t: (i, 0)),
            ],
            out_specs=pl.BlockSpec((r_blk, hw_tile), lambda i, t: (i, t)),
        ),
        compiler_params=pltpu.CompilerParams(
            dimension_semantics=("parallel", "parallel"),
            vmem_limit_bytes=budget["vmem_limit_bytes"]),
    )(x2, scale, shift)


def cin_forward(x, style_id, gamma, beta, *, hw_tile=None, force_two_pass=False):
    """x: (N, C, H, W), style_id: (N,) int, gamma/beta: (num_styles, C)."""
    N, C, H, W = x.shape
    HW = H * W
    NC = N * C
    budget = _vmem_budget()

    # Row view: one row per (sample, channel) pair.  Free (metadata) reshape.
    x2 = x.reshape(NC, HW)
    sid = style_id.astype(jnp.int32)
    g_row = gamma.astype(jnp.float32)[sid].reshape(NC, 1)   # tiny gather, O(N*C)
    b_row = beta.astype(jnp.float32)[sid].reshape(NC, 1)

    r_blk = None if force_two_pass else _pick_row_block(
        NC, HW, budget["fused_block_bytes"])

    if r_blk is not None:
        out2 = _cin_fused(x2, g_row, b_row, HW, r_blk, budget)
    else:
        out2 = _cin_two_pass(x2, g_row, b_row, HW, budget, hw_tile)
    return out2.reshape(N, C, H, W)


# --------------------------- plain-JAX reference ------------------------------

def cin_reference(x, style_id, gamma, beta):
    g = gamma[style_id][:, :, None, None]
    b = beta[style_id][:, :, None, None]
    mean = jnp.mean(x, axis=(2, 3), keepdims=True)
    std = jnp.std(x, axis=(2, 3), keepdims=True, ddof=1)    # unbiased, like torch.std
    return (x - mean) / (std + 1e-5) * g + b


# --------------------------------- main ----------------------------------------

if __name__ == "__main__":
    key = jax.random.PRNGKey(0)
    kx, kg, kb = jax.random.split(key, 3)

    N, C, H, W = 2, 4, 16, 16
    num_styles = 8

    x = jax.random.normal(kx, (N, C, H, W), jnp.float32)
    style_id = jnp.array([1, 3], dtype=jnp.int32)
    gamma = 1.0 + 0.1 * jax.random.normal(kg, (num_styles, C), jnp.float32)
    beta = 0.1 * jax.random.normal(kb, (num_styles, C), jnp.float32)

    ref = cin_reference(x, style_id, gamma, beta)

    # Default dispatch -> fused single-pass path (one read + one write of x).
    fwd = jax.jit(cin_forward)
    y = jax.block_until_ready(fwd(x, style_id, gamma, beta))
    assert y.shape == (N, C, H, W), y.shape
    assert bool(jnp.all(jnp.isfinite(y)))
    assert bool(jnp.allclose(y, ref, atol=2e-4, rtol=2e-4)), (
        float(jnp.max(jnp.abs(y - ref))))

    # Streaming two-pass path (used for very large HW): force it with two HW
    # tiles so the Welford accumulator + apply kernels are exercised too.
    fwd2 = jax.jit(functools.partial(cin_forward, force_two_pass=True, hw_tile=128))
    y2 = jax.block_until_ready(fwd2(x, style_id, gamma, beta))
    assert bool(jnp.allclose(y2, ref, atol=2e-4, rtol=2e-4)), (
        float(jnp.max(jnp.abs(y2 - ref))))

    print("KERNEL_OK")
</pallas_src>

<mosaic_0001>
module attributes {stable_mosaic.version = 11 : i64} {
  func.func @_cin_fused_kernel(%arg0: i32, %arg1: memref<8x256xf32, #tpu.memory_space<vmem>>, %arg2: memref<8x1xf32, #tpu.memory_space<vmem>>, %arg3: memref<8x1xf32, #tpu.memory_space<vmem>>, %arg4: memref<8x256xf32, #tpu.memory_space<vmem>>) attributes {dimension_semantics = [#tpu.dimension_semantics<parallel>], iteration_bounds = array<i64: 1>, scalar_prefetch = 0 : i64, scratch_operands = 0 : i64, tpu.core_type = #tpu.core_type<tc>, window_params = [{transform_indices = @transform_0, window_bounds = array<i64: 8, 256>}, {transform_indices = @transform_1, window_bounds = array<i64: 8, 1>}, {transform_indices = @transform_2, window_bounds = array<i64: 8, 1>}, {transform_indices = @transform_3, window_bounds = array<i64: 8, 256>}]} {
    %c0 = arith.constant 0 : index
    %c0_0 = arith.constant 0 : index
    %0 = vector.load %arg1[%c0, %c0_0] : memref<8x256xf32, #tpu.memory_space<vmem>>, vector<8x256xf32>
    %cst = arith.constant dense<0.000000e+00> : vector<8xf32>
    %1 = vector.multi_reduction <add>, %0, %cst [1] : vector<8x256xf32> to vector<8xf32>
    %2 = vector.shape_cast %1 : vector<8xf32> to vector<8x1xf32>
    %cst_1 = arith.constant 3.906250e-03 : f32
    %3 = vector.broadcast %cst_1 : f32 to vector<8x1xf32>
    %4 = arith.mulf %2, %3 : vector<8x1xf32>
    %5 = vector.broadcast %4 : vector<8x1xf32> to vector<8x256xf32>
    %6 = arith.subf %0, %5 : vector<8x256xf32>
    %7 = arith.mulf %6, %6 : vector<8x256xf32>
    %cst_2 = arith.constant dense<0.000000e+00> : vector<8xf32>
    %8 = vector.multi_reduction <add>, %7, %cst_2 [1] : vector<8x256xf32> to vector<8xf32>
    %9 = vector.shape_cast %8 : vector<8xf32> to vector<8x1xf32>
    %cst_3 = arith.constant 0.00392156886 : f32
    %10 = vector.broadcast %cst_3 : f32 to vector<8x1xf32>
    %11 = arith.mulf %9, %10 : vector<8x1xf32>
    %cst_4 = arith.constant 0.000000e+00 : f32
    %12 = vector.broadcast %cst_4 : f32 to vector<8x1xf32>
    %13 = arith.maximumf %11, %12 : vector<8x1xf32>
    %14 = math.sqrt %13 : vector<8x1xf32>
    %c0_5 = arith.constant 0 : index
    %c0_6 = arith.constant 0 : index
    %15 = vector.load %arg2[%c0_5, %c0_6] : memref<8x1xf32, #tpu.memory_space<vmem>>, vector<8x1xf32>
    %cst_7 = arith.constant 9.99999974E-6 : f32
    %16 = vector.broadcast %cst_7 : f32 to vector<8x1xf32>
    %17 = arith.addf %14, %16 : vector<8x1xf32>
    %18 = arith.divf %15, %17 : vector<8x1xf32>
    %19 = vector.broadcast %18 : vector<8x1xf32> to vector<8x256xf32>
    %20 = arith.mulf %6, %19 : vector<8x256xf32>
    %c0_8 = arith.constant 0 : index
    %c0_9 = arith.constant 0 : index
    %21 = vector.load %arg3[%c0_8, %c0_9] : memref<8x1xf32, #tpu.memory_space<vmem>>, vector<8x1xf32>
    %22 = vector.broadcast %21 : vector<8x1xf32> to vector<8x256xf32>
    %23 = arith.addf %20, %22 : vector<8x256xf32>
    %c0_10 = arith.constant 0 : index
    %c0_11 = arith.constant 0 : index
    %24 = vector.load %arg4[%c0_10, %c0_11] : memref<8x256xf32, #tpu.memory_space<vmem>>, vector<8x256xf32>
    tpu.vector_store %arg4[%c0_10, %c0_11], %23 {strides = array<i32>} : memref<8x256xf32, #tpu.memory_space<vmem>>, vector<8x256xf32>,
    return
  }
  func.func @transform_0(%arg0: i32) -> (i32, i32) {
    %c0_i32 = arith.constant 0 : i32
    %c0_i32_0 = arith.constant 0 : i32
    return %arg0, %c0_i32 : i32, i32
  }
  func.func @transform_1(%arg0: i32) -> (i32, i32) {
    %c0_i32 = arith.constant 0 : i32
    %c0_i32_0 = arith.constant 0 : i32
    return %arg0, %c0_i32 : i32, i32
  }
  func.func @transform_2(%arg0: i32) -> (i32, i32) {
    %c0_i32 = arith.constant 0 : i32
    %c0_i32_0 = arith.constant 0 : i32
    return %arg0, %c0_i32 : i32, i32
  }
  func.func @transform_3(%arg0: i32) -> (i32, i32) {
    %c0_i32 = arith.constant 0 : i32
    %c0_i32_0 = arith.constant 0 : i32
    return %arg0, %c0_i32 : i32, i32
  }
}

</mosaic_0001>

<bundles_post_ra>
// kernel: cin_forward.1
= control target key start
LH: loop header
LB: loop body
LE: loop exit
PB: predicated region body
PF: predicated region fallthrough
CT: control target
= control target key end

     0   :  { %v68_v10 = vmov 0   ;;  %s107_s0 = inlined_call_operand.vmem [shape: f32[8,256], index: 0, kind: input, shape index: {}]   ;;  %s108_s1 = inlined_call_operand.vmem [shape: f32[8,1], index: 1, kind: input, shape index: {}]   ;;  %s109_s2 = inlined_call_operand.vmem [shape: f32[8,1], index: 2, kind: input, shape index: {}]   ;;  %s110_s3 = inlined_call_operand.vmem [shape: f32[8,256], index: 3, kind: output, shape index: {}]  }
   0x1   :  { %v14_v0 = vld [vmem:[%s107_s0] sm:$0xff]  ;;  %v15_v1 = vld [vmem:[%s107_s0 + $0x8] sm:$0xff]  ;;  %62 = vset.pattern.permute.xlu1 %v68_v10  ;;  %63 = vset.pattern.permute.xlu0 %v68_v10 }
   0x2   :  { %v16_v2 = vadd.f32 %v15_v1, %v14_v0  ;;  %v36_v20 = vld [vmem:[%s108_s1] sm:$0xff] }
   0x3   :  { %v47_v23 = vld [vmem:[%s109_s2] sm:$0xff] }
   0x4   :  { %17 = vadd.xlane.f32.xlu0 %v16_v2 }
  0x91   :  { %v18_v3 = vpop.xlane.xlu0 %17 }
  0x92   :  { %v19_v4 = vmul.f32 0.00390625, %v18_v3 }
  0x94   :  { %v20_v5 = vsub.f32 %v14_v0, %v19_v4  ;;  %v21_v6 = vsub.f32 %v15_v1, %v19_v4 }
  0x96   :  { %v22_v7 = vmul.f32 %v20_v5, %v20_v5  ;;  %v23_v8 = vmul.f32 %v21_v6, %v21_v6 }
  0x98   :  { %v24_v9 = vadd.f32 %v23_v8, %v22_v7 }
  0x9a   :  { %25 = vadd.xlane.f32.xlu0 %v24_v9 }
 0x127   :  { %v26_v11 = vpop.xlane.xlu0 %25 }
 0x128   :  { %v27_v12 = vmul.f32 0.003921569, %v26_v11 }
 0x12a   :  { %v28_v13 = vmax.f32 %v27_v12, 0.0 }
 0x12c   :  { %64 = vrsqrt.f32 %v28_v13  ;;  %vm31_vm0 = vcmp.eq.f32.partialorder %v28_v13, inf  ;;  %v34_v16 = vand.u32 2147483648, %v28_v13  ;;  %vm33_vm1 = vcmp.eq.f32.partialorder %v28_v13, 0.0 }
 0x136   :  { %v65_v14 = vpop.eup %64 }
 0x137   :  { %v30_v15 = vmul.f32 %v65_v14, %v28_v13 }
 0x139   :  { %v32_v17 = vsel %vm31_vm0, %v28_v13, %v30_v15 }
 0x13a   :  { %v35_v18 = vsel %vm33_vm1, %v34_v16, %v32_v17 }
 0x13b   :  { %v37_v19 = vadd.f32 1e-05, %v35_v18 }
 0x13d   :  { %66 = vrcp.f32 %v37_v19 }
 0x147   :  { %v67_v21 = vpop.eup %66 }
 0x148   :  { %v39_v22 = vmul.f32 %v67_v21, %v36_v20 }
 0x14a   :  { %42 = vperm.xlu1 %62, %v39_v22  }
 0x14e   :  { %50 = vperm.xlu1 %62, %v47_v23  }
 0x1c9   :  { %v43_v24 = vpop.permute.xlu1 %42 }
 0x1ca   :  { %v45_v25 = vmul.f32 %v43_v24, %v20_v5  ;;  %v46_v26 = vmul.f32 %v43_v24, %v21_v6 }
 0x1cd   :  { %v51_v27 = vpop.permute.xlu1 %50 }
 0x1ce   :  { %v53_v28 = vadd.f32 %v51_v27, %v45_v25  ;;  %v54_v29 = vadd.f32 %v51_v27, %v46_v26 }
 0x1d0   :  { %55 = vst [vmem:[%s110_s3] sm:$0xff] %v53_v28  ;;  %56 = vst [vmem:[%s110_s3 + $0x8] sm:$0xff] %v54_v29 }

</bundles_post_ra>
